<compile_context>
chip_gen: v7x
topology: tpu7x:2x2x1
jax: 0.10.0
libtpu: 0.0.40
codegen_flags: <defaults>
</compile_context>

<pallas_src>
import functools
import math

import numpy as np
import jax
import jax.numpy as jnp
from jax import lax
from jax.experimental import pallas as pl
from jax.experimental.pallas import tpu as pltpu


_NEG_INF = -100000000.0                # matches torch masked_fill_(mask, -100000000.)


@functools.lru_cache(maxsize=1)
def _vmem_limit_bytes():
    """~Half of physical VMEM (v5e/v6e: 128 MiB -> 64 MiB, v7x: 64 MiB -> 32 MiB)."""
    cap = 64 * 1024 * 1024            # conservative default if the query fails
    try:
        cap = int(getattr(pltpu.get_tpu_info(), "vmem_capacity_bytes", cap))
    except Exception:
        pass
    return int(min(max(cap // 2, 32 * 1024 * 1024), 100 * 1024 * 1024))


def _pick_tile(dim, target, align):
    """Largest multiple of `align` <= target that divides dim; full extent fallback."""
    if dim <= target:
        return dim
    start = (target // align) * align
    for t in range(start, align - 1, -align):
        if dim % t == 0:
            return t
    # TODO(synk): full-extent fallback for unaligned dims can exceed the scoped VMEM
    # budget for very large dims; pad inputs upstream in that case.
    return dim


# ----------------------------- linear projection kernels -----------------------------

def _linear_kernel(x_ref, w_ref, b_ref, o_ref, *, compute_dtype):
    # Single-shot tile: full K resident, no accumulator / reduction axis.
    o_ref[...] = (
        jnp.dot(x_ref[...].astype(compute_dtype), w_ref[...],
                preferred_element_type=jnp.float32)
        + b_ref[...].astype(jnp.float32)
    ).astype(o_ref.dtype)


def _linear_kernel_ktiled(x_ref, w_ref, b_ref, o_ref, acc_ref, *, compute_dtype):
    @pl.when(pl.program_id(2) == 0)
    def _init():
        acc_ref[...] = jnp.zeros_like(acc_ref)

    acc_ref[...] += jnp.dot(x_ref[...].astype(compute_dtype), w_ref[...],
                            preferred_element_type=jnp.float32)

    @pl.when(pl.program_id(2) == pl.num_programs(2) - 1)
    def _finalize():
        o_ref[...] = (acc_ref[...] + b_ref[...].astype(jnp.float32)).astype(o_ref.dtype)


def linear_pallas(x, w, b, *, out_dtype=None, compute_dtype=jnp.bfloat16,
                  tm_target=512, tn_target=256, tk_target=2048):
    """x: [M, K], w: [K, N] ([in, out], torch weight transposed), b: [N]."""
    M, K = x.shape
    N = w.shape[1]
    out_dtype = out_dtype if out_dtype is not None else x.dtype
    w = w.astype(compute_dtype)          # no-op when weights were pre-converted at init
    b2 = b.reshape(1, N)

    tm = _pick_tile(M, tm_target, 8)
    tn = _pick_tile(N, tn_target, 128)
    vmem = _vmem_limit_bytes()

    if K <= tk_target:
        return pl.pallas_call(
            functools.partial(_linear_kernel, compute_dtype=compute_dtype),
            grid_spec=pltpu.PrefetchScalarGridSpec(
                num_scalar_prefetch=0,
                grid=(M // tm, N // tn),
                in_specs=[
                    pl.BlockSpec((tm, K), lambda i, j: (i, 0)),
                    pl.BlockSpec((K, tn), lambda i, j: (0, j)),
                    pl.BlockSpec((1, tn), lambda i, j: (0, j)),
                ],
                out_specs=pl.BlockSpec((tm, tn), lambda i, j: (i, j)),
            ),
            out_shape=jax.ShapeDtypeStruct((M, N), out_dtype),
            compiler_params=pltpu.CompilerParams(
                dimension_semantics=("parallel", "parallel"),
                vmem_limit_bytes=vmem,
            ),
        )(x, w, b2)

    tk = _pick_tile(K, tk_target, 128)
    return pl.pallas_call(
        functools.partial(_linear_kernel_ktiled, compute_dtype=compute_dtype),
        grid_spec=pltpu.PrefetchScalarGridSpec(
            num_scalar_prefetch=0,
            grid=(M // tm, N // tn, K // tk),
            in_specs=[
                pl.BlockSpec((tm, tk), lambda i, j, k: (i, k)),
                pl.BlockSpec((tk, tn), lambda i, j, k: (k, j)),
                pl.BlockSpec((1, tn), lambda i, j, k: (0, j)),
            ],
            out_specs=pl.BlockSpec((tm, tn), lambda i, j, k: (i, j)),
            scratch_shapes=[pltpu.VMEM((tm, tn), jnp.float32)],
        ),
        out_shape=jax.ShapeDtypeStruct((M, N), out_dtype),
        compiler_params=pltpu.CompilerParams(
            dimension_semantics=("parallel", "parallel", "arbitrary"),
            vmem_limit_bytes=vmem,
        ),
    )(x, w, b2)


# --------------------------------- attention kernel ---------------------------------

def _attn_kernel(head_keep_ref, *refs, heads_per_block, head_dim, inv_scale,
                 has_kbias, has_lbias, use_head_mask, output_attentions):
    """One (batch, head-group, query-tile) step.

    q_ref     : [tq, hg*H]   heads of this group, lane-concatenated (compute dtype)
    k_ref     : [S,  hg*H]
    v_ref     : [S,  hg*H]
    kbias_ref : [1, S]  (optional)  additive key-side mask bias (0 / -1e8)
    lbias_ref : [tq, S] (optional)  additive attention-mask bias (0 / -1e8)
    o_ref     : [tq, hg*H]   lane-dense slab of the [B, L, E] output
    w_ref     : [hg, tq, S]  attention probabilities (optional)
    """
    idx = 0
    q_ref = refs[idx]; idx += 1
    k_ref = refs[idx]; idx += 1
    v_ref = refs[idx]; idx += 1
    kbias_ref = None
    lbias_ref = None
    if has_kbias:
        kbias_ref = refs[idx]; idx += 1
    if has_lbias:
        lbias_ref = refs[idx]; idx += 1
    o_ref = refs[idx]; idx += 1
    w_ref = refs[idx] if output_attentions else None

    g = pl.program_id(1)
    H = head_dim
    hg = heads_per_block

    # Hoisted 1/sqrt(H): one multiply over the whole q slab instead of per-head scores.
    q_all = q_ref[...] * inv_scale
    k_all = k_ref[...]
    v_all = v_ref[...]

    # jnp.minimum reproduces torch's OR-then-masked_fill(-1e8) exactly (never -2e8).
    if has_kbias and has_lbias:
        bias = jnp.minimum(kbias_ref[...], lbias_ref[...])
    elif has_kbias:
        bias = kbias_ref[...]
    elif has_lbias:
        bias = lbias_ref[...]
    else:
        bias = None

    outs = []
    for j in range(hg):
        lo = j * H
        qh = q_all[:, lo:lo + H]
        kh = k_all[:, lo:lo + H]
        vh = v_all[:, lo:lo + H]

        # Q @ K^T contracting the last dims directly (no transposed-K copy).
        s = lax.dot_general(qh, kh, (((1,), (1,)), ((), ())),
                            preferred_element_type=jnp.float32)
        if bias is not None:
            s = s + bias

        m = jnp.max(s, axis=-1, keepdims=True)
        e = jnp.exp(s - m)
        denom = jnp.sum(e, axis=-1, keepdims=True)
        # TODO(synk): F.dropout on attention probs is identity for the module default p=0.0.

        keep = None
        if use_head_mask:
            keep = head_keep_ref[g * hg + j].astype(jnp.float32)

        if output_attentions:
            # Exact normalization so returned weights sum to 1 (torch softmax parity).
            p = e * pl.reciprocal(denom)
            if keep is not None:
                p = p * keep                       # torch: weights * head_mask post-softmax
            w_ref[j] = p.astype(w_ref.dtype)
            o_h = jnp.dot(p.astype(v_all.dtype), vh, preferred_element_type=jnp.float32)
        else:
            p = e * pl.reciprocal(denom, approx=True)
            o_h = jnp.dot(p.astype(v_all.dtype), vh, preferred_element_type=jnp.float32)
            if keep is not None:
                o_h = o_h * keep                   # cheaper: [tq, H] instead of [tq, S]
        outs.append(o_h)

    # Single lane-dense store of the whole [tq, hg*H] slab.
    o_slab = outs[0] if hg == 1 else jnp.concatenate(outs, axis=-1)
    o_ref[...] = o_slab.astype(o_ref.dtype)


def dot_attention_pallas(q, k, v, head_keep, num_heads, *,
                         kbias=None, lbias=None, use_head_mask=True,
                         output_attentions=True, weights_dtype=jnp.float32,
                         tq_target=256, lane_target=256):
    """q: [B, L, E], k/v: [B, S, E] (compute dtype), kbias: [B, S] f32 or None,
    lbias: [L, S] f32 or None, head_keep: [N] int32 (1 == keep head).
    Returns [B, L, E] (+ [B, N, L, S] weights)."""
    B, L, E = q.shape
    S = k.shape[1]
    N = num_heads
    H = E // N

    # Head-group size: full E when it already fits the lane target, otherwise the widest
    # multiple of 128 lanes <= lane_target so every load/store stays lane-dense.
    hg = N
    if E > lane_target:
        for cand in range(N, 0, -1):
            if N % cand:
                continue
            width = cand * H
            if width <= lane_target and width % 128 == 0:
                hg = cand
                break
    tq = _pick_tile(L, tq_target, 8)
    grid = (B, N // hg, L // tq)

    in_specs = [
        pl.BlockSpec((None, tq, hg * H), lambda b, g, qi, hk: (b, qi, g)),
        pl.BlockSpec((None, S, hg * H), lambda b, g, qi, hk: (b, 0, g)),
        pl.BlockSpec((None, S, hg * H), lambda b, g, qi, hk: (b, 0, g)),
    ]
    inputs = [q, k, v]
    if kbias is not None:
        in_specs.append(pl.BlockSpec((None, 1, S), lambda b, g, qi, hk: (b, 0, 0)))
        inputs.append(kbias.reshape(B, 1, S).astype(jnp.float32))
    if lbias is not None:
        in_specs.append(pl.BlockSpec((tq, S), lambda b, g, qi, hk: (qi, 0)))
        inputs.append(lbias.astype(jnp.float32))

    o_shape = jax.ShapeDtypeStruct((B, L, E), q.dtype)
    o_spec = pl.BlockSpec((None, tq, hg * H), lambda b, g, qi, hk: (b, qi, g))
    if output_attentions:
        out_shape = (o_shape, jax.ShapeDtypeStruct((B, N, L, S), weights_dtype))
        out_specs = (o_spec,
                     pl.BlockSpec((None, hg, tq, S), lambda b, g, qi, hk: (b, g, qi, 0)))
    else:
        out_shape = o_shape
        out_specs = o_spec

    kernel = functools.partial(
        _attn_kernel,
        heads_per_block=hg, head_dim=H,
        inv_scale=1.0 / math.sqrt(float(H)),
        has_kbias=kbias is not None, has_lbias=lbias is not None,
        use_head_mask=use_head_mask, output_attentions=output_attentions)

    return pl.pallas_call(
        kernel,
        grid_spec=pltpu.PrefetchScalarGridSpec(
            num_scalar_prefetch=1,
            grid=grid,
            in_specs=in_specs,
            out_specs=out_specs,
        ),
        out_shape=out_shape,
        compiler_params=pltpu.CompilerParams(
            dimension_semantics=("parallel", "parallel", "parallel"),
            vmem_limit_bytes=_vmem_limit_bytes(),
        ),
    )(head_keep, *inputs)


# --------------------------- MultiHeadAttention forward glue ---------------------------

def init_mha_params(key, embed_dim):
    """nn.Linear-style init (uniform +/- 1/sqrt(fan_in)); weights stored as [in, out]."""
    ks = jax.random.split(key, 8)
    bound = 1.0 / (embed_dim ** 0.5)

    def lin(kw, kb):
        w = jax.random.uniform(kw, (embed_dim, embed_dim), jnp.float32, -bound, bound)
        b = jax.random.uniform(kb, (embed_dim,), jnp.float32, -bound, bound)
        return w, b

    wq, bq = lin(ks[0], ks[1])
    wk, bk = lin(ks[2], ks[3])
    wv, bv = lin(ks[4], ks[5])
    wo, bo = lin(ks[6], ks[7])
    return dict(wq=wq, bq=bq, wk=wk, bk=bk, wv=wv, bv=bv, wo=wo, bo=bo)


def to_compute_params(params, dtype=jnp.bfloat16):
    """One-time weight conversion so the matmul kernels stream bf16 weights from HBM."""
    out = dict(params)
    for name in ("wq", "wk", "wv", "wo"):
        out[name] = params[name].astype(dtype)
    return out


def _build_bias(key_padding_mask, attention_mask, B, L, S):
    """Split the torch mask combination into a key-side [B, S] bias and an optional
    [L, S] bias so no [B, L, S] array is ever materialized in HBM."""
    kmask = None
    if key_padding_mask is not None:
        kmask = (key_padding_mask != 0)                        # [B, S]
    lbias = None
    if attention_mask is not None:
        am = (attention_mask != 0)
        if am.ndim == 1:                                       # [S] — key-positional
            am_b = jnp.broadcast_to(am[None, :], (B, S))
            kmask = am_b if kmask is None else jnp.logical_or(kmask, am_b)
        elif am.ndim == 2:                                     # [L, S]
            lbias = jnp.where(am, jnp.float32(_NEG_INF), jnp.float32(0.0))
        else:
            raise ValueError("attention_mask dim must be 1 or 2")
    kbias = None
    if kmask is not None:
        kbias = jnp.where(kmask, jnp.float32(_NEG_INF), jnp.float32(0.0))
    return kbias, lbias


def _head_keep(head_mask, N):
    if head_mask is None:
        return jnp.ones((N,), jnp.int32)
    return (head_mask == 0).astype(jnp.int32)                  # torch: head_mask.eq(0)


def multi_head_attention(params, Q, K, V, num_heads,
                         key_padding_mask=None, attention_mask=None, head_mask=None,
                         output_attentions=True, compute_dtype=jnp.bfloat16,
                         weights_dtype=jnp.float32):
    B, L, E = Q.shape
    S = K.shape[1]
    N = num_heads

    # Projections stay in [B, seq, E] and are emitted in compute_dtype (bf16): the
    # attention kernel picks heads by lane slabs, so no [B, N, L, H] transposes and no
    # per-step casts of K/V.
    q = linear_pallas(Q.reshape(B * L, E), params["wq"], params["bq"],
                      out_dtype=compute_dtype, compute_dtype=compute_dtype).reshape(B, L, E)
    k = linear_pallas(K.reshape(B * S, E), params["wk"], params["bk"],
                      out_dtype=compute_dtype, compute_dtype=compute_dtype).reshape(B, S, E)
    v = linear_pallas(V.reshape(B * S, E), params["wv"], params["bv"],
                      out_dtype=compute_dtype, compute_dtype=compute_dtype).reshape(B, S, E)

    kbias, lbias = _build_bias(key_padding_mask, attention_mask, B, L, S)
    head_keep = _head_keep(head_mask, N)

    attn = dot_attention_pallas(q, k, v, head_keep, N,
                                kbias=kbias, lbias=lbias,
                                use_head_mask=head_mask is not None,
                                output_attentions=output_attentions,
                                weights_dtype=weights_dtype)
    if output_attentions:
        attn_out, attn_weight = attn
    else:
        attn_out, attn_weight = attn, None

    out = linear_pallas(attn_out.reshape(B * L, E), params["wo"], params["bo"],
                        out_dtype=Q.dtype, compute_dtype=compute_dtype).reshape(B, L, E)
    if output_attentions:
        return out, attn_weight
    return (out,)


# ----------------------------- pure-JAX reference (f32) -----------------------------

def _mha_reference(params, Q, K, V, num_heads,
                   key_padding_mask=None, attention_mask=None, head_mask=None):
    B, L, E = Q.shape
    S = K.shape[1]
    N = num_heads
    H = E // N
    q = (Q.reshape(B * L, E) @ params["wq"] + params["bq"]).reshape(B, L, N, H).transpose(0, 2, 1, 3)
    k = (K.reshape(B * S, E) @ params["wk"] + params["bk"]).reshape(B, S, N, H).transpose(0, 2, 1, 3)
    v = (V.reshape(B * S, E) @ params["wv"] + params["bv"]).reshape(B, S, N, H).transpose(0, 2, 1, 3)

    scores = jnp.einsum("bnlh,bnsh->bnls", q, k) / (float(H) ** 0.5)
    mask_bool = None
    if key_padding_mask is not None:
        mask_bool = jnp.broadcast_to((key_padding_mask != 0)[:, None, :], (B, L, S))
    if attention_mask is not None:
        am = (attention_mask != 0)
        if am.ndim == 1:
            am = am[None, :]
        am = jnp.broadcast_to(am[None, :, :], (B, L, S))
        mask_bool = am if mask_bool is None else jnp.logical_or(mask_bool, am)
    if mask_bool is not None:
        scores = jnp.where(mask_bool[:, None, :, :], jnp.float32(_NEG_INF), scores)
    w = jax.nn.softmax(scores, axis=-1)
    keep = _head_keep(head_mask, N).astype(w.dtype)
    w = w * keep[None, :, None, None]
    o = jnp.einsum("bnls,bnsh->bnlh", w, v).transpose(0, 2, 1, 3).reshape(B, L, E)
    out = (o.reshape(B * L, E) @ params["wo"] + params["bo"]).reshape(B, L, E)
    return out, w


# -------------------------------------- demo --------------------------------------

if __name__ == "__main__":
    B, L, S, E, N = 2, 8, 8, 32, 4

    key = jax.random.PRNGKey(0)
    kp, kq, kk, kv = jax.random.split(key, 4)
    params = init_mha_params(kp, E)
    params_c = to_compute_params(params, jnp.bfloat16)   # one-time bf16 weight conversion
    Q = jax.random.normal(kq, (B, L, E), jnp.float32)
    K = jax.random.normal(kk, (B, S, E), jnp.float32)
    V = jax.random.normal(kv, (B, S, E), jnp.float32)

    # mask out the last two key positions of the second batch element, and head 2
    key_padding_mask = jnp.zeros((B, S), jnp.int32).at[1, -2:].set(1)
    head_mask = jnp.array([0, 0, 1, 0], jnp.int32)

    out, attn_w = multi_head_attention(params_c, Q, K, V, N,
                                       key_padding_mask=key_padding_mask,
                                       head_mask=head_mask)
    jax.block_until_ready((out, attn_w))
    assert out.shape == (B, L, E) and out.dtype == jnp.float32
    assert attn_w.shape == (B, N, L, S)

    out_ref, w_ref = _mha_reference(params, Q, K, V, N,
                                    key_padding_mask=key_padding_mask,
                                    head_mask=head_mask)
    # bf16 MXU operands / bf16 weights -> loose tolerances vs f32 reference.
    np.testing.assert_allclose(np.asarray(out), np.asarray(out_ref), rtol=0.08, atol=0.08)
    np.testing.assert_allclose(np.asarray(attn_w), np.asarray(w_ref), rtol=0.08, atol=0.08)

    # also exercise the fast path: no masks, no weights output.
    (out2,) = multi_head_attention(params_c, Q, K, V, N, output_attentions=False)
    jax.block_until_ready(out2)
    assert out2.shape == (B, L, E)
    out2_ref, _ = _mha_reference(params, Q, K, V, N)
    np.testing.assert_allclose(np.asarray(out2), np.asarray(out2_ref), rtol=0.08, atol=0.08)

    print("KERNEL_OK")
</pallas_src>

<mosaic_0001>
module attributes {stable_mosaic.version = 11 : i64} {
  func.func @_linear_kernel(%arg0: i32, %arg1: i32, %arg2: memref<16x32xf32, #tpu.memory_space<vmem>>, %arg3: memref<32x32xbf16, #tpu.memory_space<vmem>>, %arg4: memref<1x32xf32, #tpu.memory_space<vmem>>, %arg5: memref<16x32xbf16, #tpu.memory_space<vmem>>) attributes {dimension_semantics = [#tpu.dimension_semantics<parallel>, #tpu.dimension_semantics<parallel>], iteration_bounds = array<i64: 1, 1>, scalar_prefetch = 0 : i64, scratch_operands = 0 : i64, tpu.core_type = #tpu.core_type<tc>, window_params = [{transform_indices = @transform_0, window_bounds = array<i64: 16, 32>}, {transform_indices = @transform_1, window_bounds = array<i64: 32, 32>}, {transform_indices = @transform_2, window_bounds = array<i64: 1, 32>}, {transform_indices = @transform_3, window_bounds = array<i64: 16, 32>}]} {
    %c0 = arith.constant 0 : index
    %c0_0 = arith.constant 0 : index
    %0 = vector.load %arg2[%c0, %c0_0] : memref<16x32xf32, #tpu.memory_space<vmem>>, vector<16x32xf32>
    %1 = arith.truncf %0 : vector<16x32xf32> to vector<16x32xbf16>
    %c0_1 = arith.constant 0 : index
    %c0_2 = arith.constant 0 : index
    %2 = vector.load %arg3[%c0_1, %c0_2] : memref<32x32xbf16, #tpu.memory_space<vmem>>, vector<32x32xbf16>
    %cst = arith.constant dense<0.000000e+00> : vector<16x32xf32>
    %3 = tpu.matmul %1, %2, %cst {dimension_numbers = #tpu.dot_dimension_numbers<[1], [0], [0], [1], [0, 0, 1, 1], [], []>} : vector<16x32xbf16>, vector<32x32xbf16>, vector<16x32xf32> -> vector<16x32xf32>
    %c0_3 = arith.constant 0 : index
    %c0_4 = arith.constant 0 : index
    %4 = vector.load %arg4[%c0_3, %c0_4] : memref<1x32xf32, #tpu.memory_space<vmem>>, vector<1x32xf32>
    %5 = vector.broadcast %4 : vector<1x32xf32> to vector<16x32xf32>
    %6 = arith.addf %3, %5 : vector<16x32xf32>
    %7 = arith.truncf %6 : vector<16x32xf32> to vector<16x32xbf16>
    %c0_5 = arith.constant 0 : index
    %c0_6 = arith.constant 0 : index
    %8 = vector.load %arg5[%c0_5, %c0_6] : memref<16x32xbf16, #tpu.memory_space<vmem>>, vector<16x32xbf16>
    tpu.vector_store %arg5[%c0_5, %c0_6], %7 {strides = array<i32>} : memref<16x32xbf16, #tpu.memory_space<vmem>>, vector<16x32xbf16>,
    return
  }
  func.func @transform_0(%arg0: i32, %arg1: i32) -> (i32, i32) {
    %c0_i32 = arith.constant 0 : i32
    %c0_i32_0 = arith.constant 0 : i32
    return %arg0, %c0_i32 : i32, i32
  }
  func.func @transform_1(%arg0: i32, %arg1: i32) -> (i32, i32) {
    %c0_i32 = arith.constant 0 : i32
    %c0_i32_0 = arith.constant 0 : i32
    return %c0_i32, %arg1 : i32, i32
  }
  func.func @transform_2(%arg0: i32, %arg1: i32) -> (i32, i32) {
    %c0_i32 = arith.constant 0 : i32
    %c0_i32_0 = arith.constant 0 : i32
    return %c0_i32, %arg1 : i32, i32
  }
  func.func @transform_3(%arg0: i32, %arg1: i32) -> (i32, i32) {
    %c0_i32 = arith.constant 0 : i32
    return %arg0, %arg1 : i32, i32
  }
}

</mosaic_0001>

<bundles_post_ra>
// kernel: tpu_custom_call.1
= control target key start
LH: loop header
LB: loop body
LE: loop exit
PB: predicated region body
PF: predicated region fallthrough
CT: control target
= control target key end

     0   :  { %8 = vsyncpa [#allocation3], 0  ;;  %s320_s0 = inlined_call_operand.hbm [shape: f32[16,32], index: 0, kind: input, shape index: {}]   ;;  %s321_s1 = inlined_call_operand.hbm [shape: bf16[32,32], index: 1, kind: input, shape index: {}]   ;;  %s322_s2 = inlined_call_operand.vmem [shape: f32[1,32], index: 2, kind: input, shape index: {}]   ;;  %s323_s3 = inlined_call_operand.hbm [shape: bf16[16,32], index: 3, kind: output, shape index: {}]  }
   0x1   :  { %9 = vsyncpa [#allocation6], 0 }
   0x2   :  { %10 = vsyncpa [#allocation4], 0  ;;  %s246_s12 = smov [#allocation2]   ;;  %s174_s16 = scalar_lea.hbm %s320_s0, 256 }
   0x3   :  { %s16_s13 = sshll.u32 %s246_s12, 4  ;;  %p175_p0 = scmp.ne.s32.totalorder %s320_s0, %s174_s16  ;;  %s17_s13 = int_to_ptr.vmem [resolvable:$true] %s16_s13 }
   0x4   :  { %p178_p1 = scmp.lt.u32.totalorder %s174_s16, %s320_s0 }
   0x6   :  { %p180_p2 = pnand %p178_p1, %p175_p0 }
   0x8   :  { %183 = shalt.err (!%p180_p2)
}
   0x9   :  { %s184_s21 = scalar_lea.vmem %s17_s13, 256  ;;  %p189_p4 = scmp.lt.s32.totalorder %s17_s13, %s17_s13 }
   0xa   :  { %p185_p3 = scmp.ne.s32.totalorder %s17_s13, %s184_s21  ;;  %p190_p5 = scmp.lt.s32.totalorder %s184_s21, %s184_s21 }
   0xc   :  { %p191_p6 = por %p190_p5, %p189_p4 }
   0xe   :  { %p192_p7 = pnand %p191_p6, %p185_p3 }
  0x10   :  { %195 = shalt.err (!%p192_p7)
}
  0x11   :  { %s247_s22 = smov 128   ;;  %s248_s23 = smov 8  }
  0x12   :  { %22 = dma.hbm_to_vmem [thread:$0]  %s320_s0, 256, %s17_s13, [#allocation3], %s247_s22, %s247_s22, %s248_s23  }
  0x13   :  { %s249_s26 = smov [#allocation5]   ;;  %s196_s30 = scalar_lea.hbm %s321_s1, 256 }
  0x14   :  { %s28_s27 = sshll.u32 %s249_s26, 4  ;;  %p197_p8 = scmp.ne.s32.totalorder %s321_s1, %s196_s30  ;;  %s29_s27 = int_to_ptr.vmem [resolvable:$true] %s28_s27 }
  0x15   :  { %p200_p9 = scmp.lt.u32.totalorder %s196_s30, %s321_s1 }
  0x17   :  { %p202_p10 = pnand %p200_p9, %p197_p8 }
  0x19   :  { %205 = shalt.err (!%p202_p10)
}
  0x1a   :  { %s206_s8 = scalar_lea.vmem %s29_s27, 256  ;;  %p211_p12 = scmp.lt.s32.totalorder %s29_s27, %s29_s27 }
  0x1b   :  { %p207_p11 = scmp.ne.s32.totalorder %s29_s27, %s206_s8  ;;  %p212_p13 = scmp.lt.s32.totalorder %s206_s8, %s206_s8 }
  0x1d   :  { %p213_p0 = por %p212_p13, %p211_p12 }
  0x1f   :  { %p214_p1 = pnand %p213_p0, %p207_p11 }
  0x21   :  { %217 = shalt.err (!%p214_p1)
}
  0x22   :  { %s250_s0 = smov 64   ;;  %s251_s9 = smov 4  }
  0x23   :  { %34 = dma.hbm_to_vmem [thread:$0]  %s321_s1, 256, %s29_s27, [#allocation6], %s250_s0, %s250_s0, %s251_s9  }
  0x24   :  { %240 = dma.done.wait [#allocation3], 256  }
  0x25   :  { %241 = vsyncadd [#allocation3], 4294967040 }
  0x26   :  { %242 = dma.done.wait [#allocation6], 256  }
  0x27   :  { %243 = vsyncadd [#allocation6], 4294967040  ;;  %v252_v0 = vmov 0.0   ;;  %vm253_vm0 = vmmov 0   ;;  %v172_v1 = vld [vmem:[#allocation5] sm:$0xff]   ;;  %v173_v2 = vld [vmem:[#allocation5 + $0x8] sm:$0xff]  }
  0x28   :  { %155 = vmatprep.subr.bf16.mxu0 %v252_v0  ;;  %159 = vmatprep.mubr.msk.bf16.mxu0 %vm253_vm0, %v252_v0  ;;  %v44_v3 = vld [vmem:[#allocation2] sm:$0xff]  ;;  %v45_v4 = vld [vmem:[#allocation2 + $0x8] sm:$0xff]  ;;  %vm70_vm1 = vcmask 261120   ;;  %vm123_vm2 = vcmask 257024   ;;  %s254_s13 = smov [#allocation7]  }
  0x29   :  { %156 = vmatpush3.bf16.msra.mxu0 %v172_v1  ;;  %v46_v5 = vpack.c.bf16 %v45_v4, %v44_v3  ;;  %v144_v6 = vld [vmem:[%s322_s2] ss:$0 sm:$0xff]  ;;  %s131_s14 = sshll.u32 %s254_s13, 4  ;;  %s132_s14 = int_to_ptr.vmem [resolvable:$true] %s131_s14 }
  0x2a   :  { %157 = vmatprep.subr.bf16.mxu0 %v252_v0  ;;  %s218_s15 = scalar_lea.vmem %s132_s14, 128  ;;  %p223_p3 = scmp.lt.s32.totalorder %s132_s14, %s132_s14 }
  0x2b   :  { %p219_p2 = scmp.ne.s32.totalorder %s132_s14, %s218_s15  ;;  %p224_p4 = scmp.lt.s32.totalorder %s218_s15, %s218_s15 }
  0x2d   :  { %158 = vmatpush3.bf16.msra.mxu0 %v173_v2  ;;  %p225_p5 = por %p224_p4, %p223_p3 }
  0x2f   :  { %p226_p6 = pnand %p225_p5, %p219_p2 }
  0x30   :  { %160 = vmatmul.mubr.msk.bf16.vlgmr.msra.gmra.mrb[0].mxu0 %vm70_vm1, %v46_v5 }
 0x103   :  { %v108_v7 = vpop.f32.mrb[0].mxu0 }
 0x104   :  { %v109_v8 = vadd.f32 %v144_v6, %v108_v7  ;;  %v161_v9 = vpop.f32.mrb[1].mxu0 }
 0x105   :  { %v111_v10 = vpop.f32.mrb[2].mxu0 }
 0x106   :  { %v150_v11 = vpack.c.bf16 %v109_v8, %v109_v8  ;;  %v112_v12 = vadd.f32 %v144_v6, %v111_v10  ;;  %v162_v13 = vpop.f32.mrb[3].mxu0 }
 0x108   :  { %v151_v14 = vpack.c.bf16 %v112_v12, %v112_v12  ;;  %124 = vst.msk [vmem:[#allocation7] sm:$0xf] %vm123_vm2, %v150_v11 }
 0x10a   :  { %125 = vst.msk [vmem:[#allocation7 + $0x4] sm:$0xf] %vm123_vm2, %v151_v14 }
 0x10b   :  { %229 = shalt.err (!%p226_p6)
}
 0x10c   :  { %s230_s17 = scalar_lea.hbm %s323_s3, 128 }
 0x10d   :  { %p231_p7 = scmp.ne.s32.totalorder %s323_s3, %s230_s17  ;;  %p234_p8 = scmp.lt.u32.totalorder %s230_s17, %s323_s3 }
 0x10f   :  { %p236_p9 = pnand %p234_p8, %p231_p7 }
 0x111   :  { %239 = shalt.err (!%p236_p9)
}
 0x112   :  { %137 = dma.vmem_to_hbm [thread:$0]  %s132_s14, 128, %s323_s3, [#allocation4], %s250_s0, %s250_s0, %s251_s9  }
 0x113   :  { %244 = dma.done.wait [#allocation4], 128  }
 0x114   :  { %245 = vsyncadd [#allocation4], 4294967168 }
 0x115   :  { %141 = vsyncpa [#allocation3], 1 }
 0x116   :  { %142 = vsyncpa [#allocation6], 1 }
 0x117   :  { %143 = vsyncpa [#allocation4], 1 }

</bundles_post_ra>
